<compile_context>
chip_gen: v6e
topology: v6e:2x2x1
jax: 0.10.0
libtpu: 0.0.40
codegen_flags: <defaults>
</compile_context>

<pallas_src>
import functools
import math

import jax
import jax.numpy as jnp
from jax import lax
from jax.experimental import pallas as pl
from jax.experimental.pallas import tpu as pltpu


def _round_up(x, m):
    return (x + m - 1) // m * m


def _flash_attn_kernel(xq_ref, xkv_ref, wq_ref, bq_ref, wkv_ref, bkv_ref,
                       o_ref, q_scr, m_scr, l_scr, acc_scr,
                       *, scale, seq_len, tk):
    ki = pl.program_id(2)

    @pl.when(ki == 0)
    def _init():
        # Project this q tile once, fold the 1/sqrt(D) scale into q.
        xq = xq_ref[0]                                             # (tq, Dp)
        q = jnp.dot(xq, wq_ref[...],
                    preferred_element_type=jnp.float32) + bq_ref[...]
        q_scr[...] = q * scale
        m_scr[...] = jnp.full_like(m_scr, -jnp.inf)
        l_scr[...] = jnp.zeros_like(l_scr)
        acc_scr[...] = jnp.zeros_like(acc_scr)

    # Fused K|V projection for this kv tile: one wide (tk, 2*Dp) MXU pass.
    xkv = xkv_ref[0]                                               # (tk, Dp)
    kv = jnp.dot(xkv, wkv_ref[...],
                 preferred_element_type=jnp.float32) + bkv_ref[...]
    dp = q_scr.shape[-1]
    k = kv[:, :dp]                                                 # (tk, Dp)
    v = kv[:, dp:]                                                 # (tk, Dp)

    # Scores (tq, tk): contract the feature axis directly, no explicit transpose.
    s = lax.dot_general(q_scr[...], k, (((1,), (1,)), ((), ())),
                        preferred_element_type=jnp.float32)

    # Mask padded key positions (only emitted when S was padded).
    if seq_len % tk != 0:
        kv_pos = ki * tk + lax.broadcasted_iota(jnp.int32, s.shape, 1)
        s = jnp.where(kv_pos < seq_len, s, jnp.float32(-1e30))

    # Online softmax update.
    m_prev = m_scr[...]
    m_new = jnp.maximum(m_prev, jnp.max(s, axis=-1, keepdims=True))
    alpha = jnp.exp(m_prev - m_new)
    p = jnp.exp(s - m_new)
    l_scr[...] = alpha * l_scr[...] + jnp.sum(p, axis=-1, keepdims=True)
    acc_scr[...] = alpha * acc_scr[...] + jnp.dot(
        p.astype(v.dtype), v, preferred_element_type=jnp.float32)
    m_scr[...] = m_new

    @pl.when(ki == pl.num_programs(2) - 1)
    def _finalize():
        inv_l = pl.reciprocal(l_scr[...], approx=True)             # EUP vrcp
        o_ref[0] = (acc_scr[...] * inv_l).astype(o_ref.dtype)


def self_attention(x, wq_t, bq, wk_t, bk, wv_t, bv):
    """x: (B, S, D); w*_t: (D, D) pre-transposed weights; b*: (D,) biases."""
    B, S, D = x.shape
    scale = 1.0 / math.sqrt(D)          # scale uses the ORIGINAL feature dim

    # Lane-dense feature dim (multiple of 128); sequence tile sizes.
    Dp = _round_up(D, 128)
    if S <= 128:
        tq = tk = _round_up(S, 8)
    else:
        tq = tk = 128
    S_pad = _round_up(S, tq)
    n_q = S_pad // tq
    n_kv = S_pad // tk

    # Zero-pad activations / parameters (padded lanes stay exactly zero through
    # the projections and the attention-weighted sum, then get sliced off).
    x_p = jnp.pad(x, ((0, 0), (0, S_pad - S), (0, Dp - D)))

    def pad_w(w):
        return jnp.pad(w, ((0, Dp - D), (0, Dp - D)))

    def pad_b(b):
        return jnp.pad(b, (0, Dp - D)).reshape(1, Dp)

    wq_p = pad_w(wq_t)                                             # (Dp, Dp)
    w_kv = jnp.concatenate([pad_w(wk_t), pad_w(wv_t)], axis=1)     # (Dp, 2*Dp)
    bq_p = pad_b(bq)                                               # (1, Dp)
    b_kv = jnp.concatenate([pad_b(bk), pad_b(bv)], axis=1)         # (1, 2*Dp)

    kernel = functools.partial(_flash_attn_kernel,
                               scale=scale, seq_len=S, tk=tk)

    out_p = pl.pallas_call(
        kernel,
        out_shape=jax.ShapeDtypeStruct((B, S_pad, Dp), x.dtype),
        grid_spec=pltpu.PrefetchScalarGridSpec(
            num_scalar_prefetch=0,
            grid=(B, n_q, n_kv),
            in_specs=[
                # x for the q tile
                pl.BlockSpec((1, tq, Dp), lambda b, qi, ki: (b, qi, 0)),
                # x for the kv tile
                pl.BlockSpec((1, tk, Dp), lambda b, qi, ki: (b, ki, 0)),
                # resident parameters (constant index map)
                pl.BlockSpec((Dp, Dp), lambda b, qi, ki: (0, 0)),
                pl.BlockSpec((1, Dp), lambda b, qi, ki: (0, 0)),
                pl.BlockSpec((Dp, 2 * Dp), lambda b, qi, ki: (0, 0)),
                pl.BlockSpec((1, 2 * Dp), lambda b, qi, ki: (0, 0)),
            ],
            out_specs=pl.BlockSpec((1, tq, Dp), lambda b, qi, ki: (b, qi, 0)),
            scratch_shapes=[
                pltpu.VMEM((tq, Dp), jnp.float32),   # cached scaled q
                pltpu.VMEM((tq, 1), jnp.float32),    # running max m
                pltpu.VMEM((tq, 1), jnp.float32),    # running denom l
                pltpu.VMEM((tq, Dp), jnp.float32),   # output accumulator
            ],
        ),
        compiler_params=pltpu.CompilerParams(
            dimension_semantics=("parallel", "parallel", "arbitrary")),
    )(x_p, x_p, wq_p, bq_p, w_kv, b_kv)

    return out_p[:, :S, :D]


def _reference(x, wq_t, bq, wk_t, bk, wv_t, bv):
    q = x @ wq_t + bq
    k = x @ wk_t + bk
    v = x @ wv_t + bv
    scores = jnp.einsum("bsd,btd->bst", q, k) / math.sqrt(x.shape[-1])
    attn = jax.nn.softmax(scores, axis=-1)
    return jnp.einsum("bst,btd->bsd", attn, v)


if __name__ == "__main__":
    B, S, D = 2, 8, 32
    key = jax.random.PRNGKey(0)
    kx, kq, kbq, kk, kbk, kv, kbv = jax.random.split(key, 7)

    x = jax.random.normal(kx, (B, S, D), dtype=jnp.float32)

    # Deterministic parameter init mimicking nn.Linear's uniform(-1/sqrt(dim), 1/sqrt(dim)).
    bound = 1.0 / math.sqrt(D)
    # PyTorch weight shape is (out, in); store transposed (in, out) for x @ W_t.
    wq_t = jax.random.uniform(kq, (D, D), jnp.float32, -bound, bound)
    wk_t = jax.random.uniform(kk, (D, D), jnp.float32, -bound, bound)
    wv_t = jax.random.uniform(kv, (D, D), jnp.float32, -bound, bound)
    bq = jax.random.uniform(kbq, (D,), jnp.float32, -bound, bound)
    bk = jax.random.uniform(kbk, (D,), jnp.float32, -bound, bound)
    bv = jax.random.uniform(kbv, (D,), jnp.float32, -bound, bound)

    out = self_attention(x, wq_t, bq, wk_t, bk, wv_t, bv)
    out = jax.block_until_ready(out)

    ref = _reference(x, wq_t, bq, wk_t, bk, wv_t, bv)
    assert out.shape == (B, S, D)
    # Tolerance loosened slightly for pl.reciprocal(approx=True) in the softmax
    # normalization (EUP approximate reciprocal); still tight enough to catch
    # any real semantic bug (scale, bias, masking, accumulation).
    assert jnp.allclose(out, ref, atol=2e-2, rtol=2e-2), "mismatch vs reference"

    print("KERNEL_OK")
</pallas_src>

<mosaic_0001>
module attributes {stable_mosaic.version = 11 : i64} {
  func.func @_flash_attn_kernel(%arg0: i32, %arg1: i32, %arg2: i32, %arg3: memref<1x8x128xf32, #tpu.memory_space<vmem>>, %arg4: memref<1x8x128xf32, #tpu.memory_space<vmem>>, %arg5: memref<128x128xf32, #tpu.memory_space<vmem>>, %arg6: memref<1x128xf32, #tpu.memory_space<vmem>>, %arg7: memref<128x256xf32, #tpu.memory_space<vmem>>, %arg8: memref<1x256xf32, #tpu.memory_space<vmem>>, %arg9: memref<1x8x128xf32, #tpu.memory_space<vmem>>, %arg10: memref<8x128xf32, #tpu.memory_space<vmem>>, %arg11: memref<8x1xf32, #tpu.memory_space<vmem>>, %arg12: memref<8x1xf32, #tpu.memory_space<vmem>>, %arg13: memref<8x128xf32, #tpu.memory_space<vmem>>) attributes {dimension_semantics = [#tpu.dimension_semantics<parallel>, #tpu.dimension_semantics<parallel>, #tpu.dimension_semantics<arbitrary>], iteration_bounds = array<i64: 2, 1, 1>, scalar_prefetch = 0 : i64, scratch_operands = 4 : i64, tpu.core_type = #tpu.core_type<tc>, window_params = [{transform_indices = @transform_0, window_bounds = array<i64: 1, 8, 128>}, {transform_indices = @transform_1, window_bounds = array<i64: 1, 8, 128>}, {pipeline_mode = #tpu.pipeline_mode<synchronous>, transform_indices = @transform_2, window_bounds = array<i64: 128, 128>}, {pipeline_mode = #tpu.pipeline_mode<synchronous>, transform_indices = @transform_3, window_bounds = array<i64: 1, 128>}, {pipeline_mode = #tpu.pipeline_mode<synchronous>, transform_indices = @transform_4, window_bounds = array<i64: 128, 256>}, {pipeline_mode = #tpu.pipeline_mode<synchronous>, transform_indices = @transform_5, window_bounds = array<i64: 1, 256>}, {transform_indices = @transform_6, window_bounds = array<i64: 1, 8, 128>}]} {
    %c0_i32 = arith.constant 0 : i32
    %0 = arith.cmpi eq, %arg2, %c0_i32 : i32
    %1 = arith.extui %0 : i1 to i32
    %c0_i32_0 = arith.constant 0 : i32
    %2 = arith.cmpi ne, %1, %c0_i32_0 : i32
    scf.if %2 {
      %c0_27 = arith.constant 0 : index
      %c0_28 = arith.constant 0 : index
      %c0_29 = arith.constant 0 : index
      %39 = vector.load %arg3[%c0_27, %c0_28, %c0_29] : memref<1x8x128xf32, #tpu.memory_space<vmem>>, vector<1x8x128xf32>
      %40 = vector.shape_cast %39 : vector<1x8x128xf32> to vector<8x128xf32>
      %c0_30 = arith.constant 0 : index
      %c0_31 = arith.constant 0 : index
      %41 = vector.load %arg5[%c0_30, %c0_31] : memref<128x128xf32, #tpu.memory_space<vmem>>, vector<128x128xf32>
      %cst_32 = arith.constant dense<0.000000e+00> : vector<8x128xf32>
      %42 = tpu.matmul %40, %41, %cst_32 {dimension_numbers = #tpu.dot_dimension_numbers<[1], [0], [0], [1], [0, 0, 1, 1], [], []>} : vector<8x128xf32>, vector<128x128xf32>, vector<8x128xf32> -> vector<8x128xf32>
      %c0_33 = arith.constant 0 : index
      %c0_34 = arith.constant 0 : index
      %43 = vector.load %arg6[%c0_33, %c0_34] : memref<1x128xf32, #tpu.memory_space<vmem>>, vector<1x128xf32>
      %44 = vector.broadcast %43 : vector<1x128xf32> to vector<8x128xf32>
      %45 = arith.addf %42, %44 : vector<8x128xf32>
      %cst_35 = arith.constant 0.176776692 : f32
      %46 = vector.broadcast %cst_35 : f32 to vector<8x128xf32>
      %47 = arith.mulf %45, %46 : vector<8x128xf32>
      %c0_36 = arith.constant 0 : index
      %c0_37 = arith.constant 0 : index
      %48 = vector.load %arg10[%c0_36, %c0_37] : memref<8x128xf32, #tpu.memory_space<vmem>>, vector<8x128xf32>
      tpu.vector_store %arg10[%c0_36, %c0_37], %47 {strides = array<i32>} : memref<8x128xf32, #tpu.memory_space<vmem>>, vector<8x128xf32>,
      %cst_38 = arith.constant 0xFF800000 : f32
      %49 = vector.broadcast %cst_38 : f32 to vector<8x1xf32>
      %c0_39 = arith.constant 0 : index
      %c0_40 = arith.constant 0 : index
      %50 = vector.load %arg11[%c0_39, %c0_40] : memref<8x1xf32, #tpu.memory_space<vmem>>, vector<8x1xf32>
      tpu.vector_store %arg11[%c0_39, %c0_40], %49 {strides = array<i32>} : memref<8x1xf32, #tpu.memory_space<vmem>>, vector<8x1xf32>,
      %cst_41 = arith.constant 0.000000e+00 : f32
      %51 = vector.broadcast %cst_41 : f32 to vector<8x1xf32>
      %c0_42 = arith.constant 0 : index
      %c0_43 = arith.constant 0 : index
      %52 = vector.load %arg12[%c0_42, %c0_43] : memref<8x1xf32, #tpu.memory_space<vmem>>, vector<8x1xf32>
      tpu.vector_store %arg12[%c0_42, %c0_43], %51 {strides = array<i32>} : memref<8x1xf32, #tpu.memory_space<vmem>>, vector<8x1xf32>,
      %cst_44 = arith.constant 0.000000e+00 : f32
      %53 = vector.broadcast %cst_44 : f32 to vector<8x128xf32>
      %c0_45 = arith.constant 0 : index
      %c0_46 = arith.constant 0 : index
      %54 = vector.load %arg13[%c0_45, %c0_46] : memref<8x128xf32, #tpu.memory_space<vmem>>, vector<8x128xf32>
      tpu.vector_store %arg13[%c0_45, %c0_46], %53 {strides = array<i32>} : memref<8x128xf32, #tpu.memory_space<vmem>>, vector<8x128xf32>,
    } else {
    }
    %c0 = arith.constant 0 : index
    %c0_1 = arith.constant 0 : index
    %c0_2 = arith.constant 0 : index
    %3 = vector.load %arg4[%c0, %c0_1, %c0_2] : memref<1x8x128xf32, #tpu.memory_space<vmem>>, vector<1x8x128xf32>
    %4 = vector.shape_cast %3 : vector<1x8x128xf32> to vector<8x128xf32>
    %c0_3 = arith.constant 0 : index
    %c0_4 = arith.constant 0 : index
    %5 = vector.load %arg7[%c0_3, %c0_4] : memref<128x256xf32, #tpu.memory_space<vmem>>, vector<128x256xf32>
    %cst = arith.constant dense<0.000000e+00> : vector<8x256xf32>
    %6 = tpu.matmul %4, %5, %cst {dimension_numbers = #tpu.dot_dimension_numbers<[1], [0], [0], [1], [0, 0, 1, 1], [], []>} : vector<8x128xf32>, vector<128x256xf32>, vector<8x256xf32> -> vector<8x256xf32>
    %c0_5 = arith.constant 0 : index
    %c0_6 = arith.constant 0 : index
    %7 = vector.load %arg8[%c0_5, %c0_6] : memref<1x256xf32, #tpu.memory_space<vmem>>, vector<1x256xf32>
    %8 = vector.broadcast %7 : vector<1x256xf32> to vector<8x256xf32>
    %9 = arith.addf %6, %8 : vector<8x256xf32>
    %10 = vector.extract_strided_slice %9 {offsets = [0, 0], sizes = [8, 128], strides = [1, 1]} : vector<8x256xf32> to vector<8x128xf32>
    %11 = vector.extract_strided_slice %9 {offsets = [0, 128], sizes = [8, 128], strides = [1, 1]} : vector<8x256xf32> to vector<8x128xf32>
    %c0_7 = arith.constant 0 : index
    %c0_8 = arith.constant 0 : index
    %12 = vector.load %arg10[%c0_7, %c0_8] : memref<8x128xf32, #tpu.memory_space<vmem>>, vector<8x128xf32>
    %cst_9 = arith.constant dense<0.000000e+00> : vector<8x8xf32>
    %13 = tpu.matmul %12, %10, %cst_9 {dimension_numbers = #tpu.dot_dimension_numbers<[1], [1], [0], [0], [0, 0, 1, 0], [], []>} : vector<8x128xf32>, vector<8x128xf32>, vector<8x8xf32> -> vector<8x8xf32>
    %c0_10 = arith.constant 0 : index
    %c0_11 = arith.constant 0 : index
    %14 = vector.load %arg11[%c0_10, %c0_11] : memref<8x1xf32, #tpu.memory_space<vmem>>, vector<8x1xf32>
    %cst_12 = arith.constant dense<0xFF800000> : vector<8xf32>
    %15 = vector.multi_reduction <maximumf>, %13, %cst_12 [1] : vector<8x8xf32> to vector<8xf32>
    %16 = vector.shape_cast %15 : vector<8xf32> to vector<8x1xf32>
    %17 = arith.maximumf %14, %16 : vector<8x1xf32>
    %18 = arith.subf %14, %17 : vector<8x1xf32>
    %19 = math.exp %18 : vector<8x1xf32>
    %20 = vector.broadcast %17 : vector<8x1xf32> to vector<8x8xf32>
    %21 = arith.subf %13, %20 : vector<8x8xf32>
    %22 = math.exp %21 : vector<8x8xf32>
    %c0_13 = arith.constant 0 : index
    %c0_14 = arith.constant 0 : index
    %23 = vector.load %arg12[%c0_13, %c0_14] : memref<8x1xf32, #tpu.memory_space<vmem>>, vector<8x1xf32>
    %24 = arith.mulf %19, %23 : vector<8x1xf32>
    %cst_15 = arith.constant dense<0.000000e+00> : vector<8xf32>
    %25 = vector.multi_reduction <add>, %22, %cst_15 [1] : vector<8x8xf32> to vector<8xf32>
    %26 = vector.shape_cast %25 : vector<8xf32> to vector<8x1xf32>
    %27 = arith.addf %24, %26 : vector<8x1xf32>
    %c0_16 = arith.constant 0 : index
    %c0_17 = arith.constant 0 : index
    %28 = vector.load %arg12[%c0_16, %c0_17] : memref<8x1xf32, #tpu.memory_space<vmem>>, vector<8x1xf32>
    tpu.vector_store %arg12[%c0_16, %c0_17], %27 {strides = array<i32>} : memref<8x1xf32, #tpu.memory_space<vmem>>, vector<8x1xf32>,
    %c0_18 = arith.constant 0 : index
    %c0_19 = arith.constant 0 : index
    %29 = vector.load %arg13[%c0_18, %c0_19] : memref<8x128xf32, #tpu.memory_space<vmem>>, vector<8x128xf32>
    %30 = vector.broadcast %19 : vector<8x1xf32> to vector<8x128xf32>
    %31 = arith.mulf %30, %29 : vector<8x128xf32>
    %cst_20 = arith.constant dense<0.000000e+00> : vector<8x128xf32>
    %32 = tpu.matmul %22, %11, %cst_20 {dimension_numbers = #tpu.dot_dimension_numbers<[1], [0], [0], [1], [0, 0, 1, 1], [], []>} : vector<8x8xf32>, vector<8x128xf32>, vector<8x128xf32> -> vector<8x128xf32>
    %33 = arith.addf %31, %32 : vector<8x128xf32>
    %c0_21 = arith.constant 0 : index
    %c0_22 = arith.constant 0 : index
    %34 = vector.load %arg13[%c0_21, %c0_22] : memref<8x128xf32, #tpu.memory_space<vmem>>, vector<8x128xf32>
    tpu.vector_store %arg13[%c0_21, %c0_22], %33 {strides = array<i32>} : memref<8x128xf32, #tpu.memory_space<vmem>>, vector<8x128xf32>,
    %c0_23 = arith.constant 0 : index
    %c0_24 = arith.constant 0 : index
    %35 = vector.load %arg11[%c0_23, %c0_24] : memref<8x1xf32, #tpu.memory_space<vmem>>, vector<8x1xf32>
    tpu.vector_store %arg11[%c0_23, %c0_24], %17 {strides = array<i32>} : memref<8x1xf32, #tpu.memory_space<vmem>>, vector<8x1xf32>,
    %c0_i32_25 = arith.constant 0 : i32
    %36 = arith.cmpi eq, %arg2, %c0_i32_25 : i32
    %37 = arith.extui %36 : i1 to i32
    %c0_i32_26 = arith.constant 0 : i32
    %38 = arith.cmpi ne, %37, %c0_i32_26 : i32
    scf.if %38 {
      %c0_27 = arith.constant 0 : index
      %c0_28 = arith.constant 0 : index
      %39 = vector.load %arg12[%c0_27, %c0_28] : memref<8x1xf32, #tpu.memory_space<vmem>>, vector<8x1xf32>
      %40 = tpu.reciprocal %39 {approx = true} : vector<8x1xf32> -> vector<8x1xf32>
      %c0_29 = arith.constant 0 : index
      %c0_30 = arith.constant 0 : index
      %41 = vector.load %arg13[%c0_29, %c0_30] : memref<8x128xf32, #tpu.memory_space<vmem>>, vector<8x128xf32>
      %42 = vector.broadcast %40 : vector<8x1xf32> to vector<8x128xf32>
      %43 = arith.mulf %41, %42 : vector<8x128xf32>
      %c0_31 = arith.constant 0 : index
      %c0_32 = arith.constant 0 : index
      %c0_33 = arith.constant 0 : index
      %44 = vector.load %arg9[%c0_31, %c0_32, %c0_33] : memref<1x8x128xf32, #tpu.memory_space<vmem>>, vector<1x8x128xf32>
      %45 = vector.shape_cast %44 : vector<1x8x128xf32> to vector<8x128xf32>
      %46 = vector.shape_cast %43 : vector<8x128xf32> to vector<1x8x128xf32>
      tpu.vector_store %arg9[%c0_31, %c0_32, %c0_33], %46 {strides = array<i32>} : memref<1x8x128xf32, #tpu.memory_space<vmem>>, vector<1x8x128xf32>,
    } else {
    }
    return
  }
  func.func @transform_0(%arg0: i32, %arg1: i32, %arg2: i32) -> (i32, i32, i32) {
    %c0_i32 = arith.constant 0 : i32
    %c0_i32_0 = arith.constant 0 : i32
    return %arg0, %arg1, %c0_i32 : i32, i32, i32
  }
  func.func @transform_1(%arg0: i32, %arg1: i32, %arg2: i32) -> (i32, i32, i32) {
    %c0_i32 = arith.constant 0 : i32
    %c0_i32_0 = arith.constant 0 : i32
    return %arg0, %arg2, %c0_i32 : i32, i32, i32
  }
  func.func @transform_2(%arg0: i32, %arg1: i32, %arg2: i32) -> (i32, i32) {
    %c0_i32 = arith.constant 0 : i32
    %c0_i32_0 = arith.constant 0 : i32
    %c0_i32_1 = arith.constant 0 : i32
    return %c0_i32, %c0_i32_0 : i32, i32
  }
  func.func @transform_3(%arg0: i32, %arg1: i32, %arg2: i32) -> (i32, i32) {
    %c0_i32 = arith.constant 0 : i32
    %c0_i32_0 = arith.constant 0 : i32
    %c0_i32_1 = arith.constant 0 : i32
    return %c0_i32, %c0_i32_0 : i32, i32
  }
  func.func @transform_4(%arg0: i32, %arg1: i32, %arg2: i32) -> (i32, i32) {
    %c0_i32 = arith.constant 0 : i32
    %c0_i32_0 = arith.constant 0 : i32
    %c0_i32_1 = arith.constant 0 : i32
    return %c0_i32, %c0_i32_0 : i32, i32
  }
  func.func @transform_5(%arg0: i32, %arg1: i32, %arg2: i32) -> (i32, i32) {
    %c0_i32 = arith.constant 0 : i32
    %c0_i32_0 = arith.constant 0 : i32
    %c0_i32_1 = arith.constant 0 : i32
    return %c0_i32, %c0_i32_0 : i32, i32
  }
  func.func @transform_6(%arg0: i32, %arg1: i32, %arg2: i32) -> (i32, i32, i32) {
    %c0_i32 = arith.constant 0 : i32
    %c0_i32_0 = arith.constant 0 : i32
    return %arg0, %arg1, %c0_i32 : i32, i32, i32
  }
}

</mosaic_0001>

<bundles_post_ra>
// kernel: tpu_custom_call.1
= control target key start
LH: loop header
LB: loop body
LE: loop exit
PB: predicated region body
PF: predicated region fallthrough
CT: control target
= control target key end

     0   :  { %s1597_s0 = inlined_call_operand.hbm [shape: f32[2,8,128], index: 0, kind: input, shape index: {}]   ;;  %s1598_s1 = inlined_call_operand.hbm [shape: f32[2,8,128], index: 1, kind: input, shape index: {}]   ;;  %s1599_s2 = inlined_call_operand.hbm [shape: f32[128,128], index: 2, kind: input, shape index: {}]   ;;  %s1600_s3 = inlined_call_operand.vmem [shape: f32[1,128], index: 3, kind: input, shape index: {}]   ;;  %s1601_s4 = inlined_call_operand.hbm [shape: f32[128,256], index: 4, kind: input, shape index: {}]   ;;  %s1602_s5 = inlined_call_operand.vmem [shape: f32[1,256], index: 5, kind: input, shape index: {}]   ;;  %s1603_s6 = inlined_call_operand.hbm [shape: f32[2,8,128], index: 6, kind: output, shape index: {}]  }
   0x1   :  { %1605 = sst [smem:[#allocation20_spill]] %s1597_s0 }
   0x2   :  { %1606 = sst [smem:[#allocation21_spill]] %s1598_s1 }
   0x3   :  { %1607 = sst [smem:[#allocation22_spill]] %s1599_s2 }
   0x4   :  { %1608 = sst [smem:[#allocation23_spill]] %s1601_s4 }
   0x5   :  { %11 = vsyncpa [#allocation7], 0 }
   0x6   :  { %13 = vsyncpa [#allocation7 + $0x1], 0 }
   0x7   :  { %14 = vsyncpa [#allocation10], 0 }
   0x8   :  { %16 = vsyncpa [#allocation10 + $0x1], 0 }
   0x9   :  { %17 = vsyncpa [#allocation13], 0 }
   0xa   :  { %18 = vsyncpa [#allocation8], 0 }
   0xb   :  { %20 = vsyncpa [#allocation8 + $0x1], 0  ;;  %s1355_s21 = smov 0   ;;  %s1357_s22 = smov 0  }
   0xc   :  { %s1359_s23 = smov 0   ;;  %s1361_s24 = smov 0  }
   0xd   :  { %s1363_s25 = smov 0   ;;  %s1365_s26 = smov 0  }
   0xe LB: > { %s1386_s27 = sadd.s32 4294967295, %s1305_s26   ;;  %s914_s28 = sadd.s32 4294967294, %s1305_s26   ;;  %s1305_s26 = sphi %s1365_s26, %s26_s26   ;;  %s1301_s25 = sphi %s1363_s25, %s1630_s25   ;;  %s1297_s24 = sphi %s1361_s24, %s1629_s24   ;;  %s1293_s23 = sphi %s1359_s23, %s1628_s23   ;;  %s1289_s22 = sphi %s1357_s22, %s1627_s22   ;;  %s1285_s21 = sphi %s1355_s21, %s1626_s21  }
   0xf   : > { %p67_p0 = scmp.ne.s32.totalorder %s1289_s22, %s1285_s21  ;;  %p1604_p1 = scmp.eq.s32.totalorder %s1386_s27, 0 }
  0x10   : > { %p211_p3 = scmp.eq.s32.totalorder %s914_s28, 1  ;;  %p915_p5 = scmp.ge.s32.totalorder %s1305_s26, 1 }
  0x11   : > { %p1395_p4 = por %p1604_p1, %p67_p0  ;;  %p218_p7 = scmp.lt.s32.totalorder %s1305_s26, 3 }
  0x12   : > { %p1400_p6 = por %p211_p3, %p67_p0  ;;  %s1307_s8 = smov [#allocation11]  }
  0x13   : > { %p1405_p8 = pnand %p915_p5, %p218_p7  ;;  %s230_s9 = sshll.u32 %s1307_s8, 4  ;;  %s231_s9 = int_to_ptr.vmem [resolvable:$true] %s230_s9 }
  0x14   : > { %s1610_s30 = scalar_select %p1400_p6, 1, 0 }
  0x15   : > { %p1015_p9 = pneg %p1405_p8  ;;  %s1308_s11 = smov [#allocation12]  }
  0x16   : > { %s246_s12 = sshll.u32 %s1308_s11, 4  ;;  %s1116_s13 = scalar_lea.vmem %s231_s9, 2048  ;;  %s247_s12 = int_to_ptr.vmem [resolvable:$true] %s246_s12 }
  0x17   : > { %p1414_p11 = pnand %p1015_p9, %p1604_p1  ;;  %p1117_p13 = scmp.ne.s32.totalorder %s231_s9, %s1116_s13 }
  0x18   : > { %p1124_p5 = scmp.lt.s32.totalorder %s231_s9, %s231_s9  ;;  %p1125_p7 = scmp.lt.s32.totalorder %s1116_s13, %s1116_s13 }
  0x19   : > { %p1107_p12 = pneg %p1414_p11 }
  0x1a   : > { %p1126_p10 = por %p1125_p7, %p1124_p5 }
  0x1b   : > { %p1119_p0 = pnand %p1117_p13, %p1107_p12 }
  0x1d   : > { %p1120_p3 = pneg %p1119_p0 }
  0x1f   : > { %p1127_p9 = pnand %p1126_p10, %p1120_p3 }
  0x21   : > { %1130 = shalt.err (!%p1127_p9)
}
  0x22   : > { %s1309_s14 = smov 128   ;;  %s1310_s15 = smov 8  }
  0x23   : > { %s1613_s2 = sld [smem:[#allocation22_spill]]  ;;  %s1142_s18 = scalar_lea.vmem %s247_s12, 4096 }
  0x24   : > { %p1143_p1 = scmp.ne.s32.totalorder %s247_s12, %s1142_s18  ;;  %p1150_p2 = scmp.lt.s32.totalorder %s247_s12, %s247_s12 }
  0x25   : > { %p1151_p6 = scmp.lt.s32.totalorder %s1142_s18, %s1142_s18 }
  0x26   : > { %p1145_p13 = pnand %p1143_p1, %p1107_p12 }
  0x27   : > { %p1152_p5 = por %p1151_p6, %p1150_p2 }
  0x28   : > { %p1146_p0 = pneg %p1145_p13 }
  0x29   : > { %1018 = dma.hbm_to_vmem [thread:$0]  (!%p1414_p11), %s1613_s2, 2048, %s231_s9, [#allocation10], %s1309_s14, %s1309_s14, %s1310_s15  }
  0x2a   : > { %p1153_p10 = pnand %p1152_p5, %p1146_p0 }
  0x2c   : > { %1156 = shalt.err (!%p1153_p10)
}
  0x2d   : > { %s1311_s19 = smov 256   ;;  %s1312_s20 = smov 16  }
  0x2e   : > { %s1614_s4 = sld [smem:[#allocation23_spill]]  ;;  %s45_s9 = sadd.s32 1, %s1301_s25 }
  0x2f   : > { %s54_s11 = sadd.s32 1, %s1293_s23  ;;  %p47_p1 = scmp.ge.s32.totalorder %s45_s9, 2 }
  0x30   : > { %p61_p2 = scmp.ne.s32.totalorder %s1293_s23, %s1289_s22  ;;  %p62_p6 = scmp.eq.s32.totalorder %s1305_s26, 0 }
  0x31   : > { %p1035_p12 = scmp.lt.s32.totalorder %s1305_s26, 2  ;;  %s1632_s9 = smov (%p47_p1, %s45_s9), 0 }
  0x32   : > { %p63_p3 = por %p62_p6, %p61_p2  ;;  %p1615_p7 = scmp.eq.s32.totalorder %s1386_s27, 1 }
  0x33   : > { %s49_s10 = ssub.s32 %s1301_s25, %s1632_s9  ;;  %s263_s14 = sand.u32 1, %s1293_s23  }
  0x34   : > { %1021 = dma.hbm_to_vmem [thread:$0]  (!%p1414_p11), %s1614_s4, 4096, %s247_s12, [#allocation13], %s1311_s19, %s1311_s19, %s1312_s20  }
  0x35   : > { %p1446_p9 = por %p1615_p7, %p61_p2  ;;  %p52_p13 = scmp.eq.s32.totalorder %s49_s10, 0 }
  0x36   : > { %s919_s12 = sshll.u32 %s263_s14, 3  ;;  %s920_s15 = sshll.u32 %s1301_s25, 7 }
  0x37   : > { %s1455_s16 = scalar_select %p52_p13, %s1293_s23, %s54_s11  }
  0x38   : > { %s1617_s0 = sld [smem:[#allocation20_spill]]  ;;  %s267_s20 = scalar_lea.vmem [#allocation6], %s919_s12 }
  0x39   : > { %s275_s28 = sshll.u32 %s267_s20, 4  ;;  %p1462_p11 = pnand %p1035_p12, %p63_p3  ;;  %s276_s28 = int_to_ptr.vmem [resolvable:$true] %s275_s28 }
  0x3a   : > { %s1619_s1 = sld [smem:[#allocation21_spill]]  ;;  %s264_s11 = scalar_lea.sflag [#allocation7], %s263_s14 }
  0x3b   : > { %p1159_p0 = pneg %p1462_p11  ;;  %s1170_s17 = scalar_lea.vmem %s276_s28, 128 }
  0x3c   : > { %p1171_p5 = scmp.ne.s32.totalorder %s276_s28, %s1170_s17  ;;  %s1313_s18 = smov [#allocation6]  }
  0x3d   : > { %s1175_s20 = sshll.u32 %s1313_s18, 4  ;;  %s1176_s20 = int_to_ptr.vmem [resolvable:$false] %s1175_s20 }
  0x3e   : > { %s273_s19 = scalar_lea.hbm %s1617_s0, %s920_s15  ;;  %p1173_p10 = pnand %p1171_p5, %p1159_p0 }
  0x3f   : > { %s1177_s0 = scalar_lea.vmem %s1176_s20, 256  ;;  %p1178_p2 = scmp.lt.s32.totalorder %s276_s28, %s1176_s20 }
  0x40   : > { %s1469_s4 = scalar_lea.hbm %s1619_s1, %s920_s15  ;;  %p1174_p1 = pneg %p1173_p10 }
  0x41   : > { %p1179_p6 = scmp.lt.s32.totalorder %s1177_s0, %s1170_s17 }
  0x43   : > { %p1180_p12 = por %p1179_p6, %p1178_p2 }
  0x45   : > { %p1181_p3 = pnand %p1180_p12, %p1174_p1 }
  0x47   : > { %1184 = shalt.err (!%p1181_p3)
}
  0x48   : > { %1025 = dma.hbm_to_vmem [thread:$0]  (!%p1462_p11), %s273_s19, 128, %s276_s28, %s264_s11  }
  0x49   : > { %s282_s2 = sand.u32 1, %s1305_s26   ;;  %s286_s14 = scalar_lea.vmem [#allocation9], %s919_s12 }
  0x4a   : > { %s294_s15 = sshll.u32 %s286_s14, 4  ;;  %s283_s10 = scalar_lea.sflag [#allocation10], %s282_s2  ;;  %s295_s15 = int_to_ptr.vmem [resolvable:$true] %s294_s15 }
  0x4b   : > { %s1198_s1 = scalar_lea.vmem %s295_s15, 128  ;;  %s1314_s0 = smov [#allocation9]  }
  0x4c   : > { %p1199_p7 = scmp.ne.s32.totalorder %s295_s15, %s1198_s1  ;;  %s1203_s17 = sshll.u32 %s1314_s0, 4  ;;  %s1204_s17 = int_to_ptr.vmem [resolvable:$false] %s1203_s17 }
  0x4d   : > { %s1205_s18 = scalar_lea.vmem %s1204_s17, 256  ;;  %p1206_p10 = scmp.lt.s32.totalorder %s295_s15, %s1204_s17 }
  0x4e   : > { %p1201_p13 = pnand %p1199_p7, %p1159_p0  ;;  %p1207_p1 = scmp.lt.s32.totalorder %s1205_s18, %s1198_s1 }
  0x50   : > { %p1202_p5 = pneg %p1201_p13  ;;  %p1208_p2 = por %p1207_p1, %p1206_p10 }
  0x52   : > { %p1209_p6 = pnand %p1208_p2, %p1202_p5 }
  0x54   : > { %1212 = shalt.err (!%p1209_p6)
}
  0x55   : > { %1028 = dma.hbm_to_vmem [thread:$0]  (!%p1462_p11), %s1469_s4, 128, %s295_s15, %s283_s10  }
  0x56   : > { %303 = sbr.rel (%p1405_p8) target bundleno = 1111 (0x457), region = 44  ;;  %s1488_s12 = sand.u32 (!%p1405_p8), 1, %s1289_s22  }
  0x57   : > { %s1491_s19 = sshll.u32 (!%p1405_p8), %s1488_s12, 3  ;;  %s306_s1 = scalar_lea.sflag (!%p1405_p8), [#allocation7], %s1488_s12 }
  0x58   : > { %s309_s28 = scalar_lea.vmem (!%p1405_p8), [#allocation6], %s1491_s19 }
  0x5b   : > { %1264 = dma.done.wait (%p1395_p4), %s306_s1, 128  }
  0x5c   : > { %1266 = vsyncadd (%p1395_p4), %s306_s1, 4294967168  ;;  %s314_s4 = sand.u32 1, %s1386_s27   ;;  %s318_s8 = scalar_lea.vmem [#allocation9], %s1491_s19 }
  0x5d   : > { %s315_s7 = scalar_lea.sflag [#allocation10], %s314_s4 }
  0x5e   : > { %1268 = dma.done.wait (%p1395_p4), %s315_s7, 128  }
  0x5f   : > { %1270 = vsyncadd (%p1395_p4), %s315_s7, 4294967168  ;;  %p1620_p8 = scmp.eq.s32.totalorder %s1386_s27, 0 }
  0x61   : > { %1272 = dma.done.wait (%p1620_p8), [#allocation10], 2048   ;;  %p1621_p11 = pmov %p1620_p8 }
  0x62   : > { %p1622_p0 = pmov %p1620_p8 }
  0x63   : > { %1274 = vsyncadd (%p1621_p11), [#allocation10], 4294965248 }
  0x64   : > { %1276 = dma.done.wait (%p1622_p0), [#allocation13], 4096   ;;  %p1623_p12 = pmov %p1622_p0 }
  0x65   : > { %v1315_v0 = vmov 0.0   ;;  %vm1316_vm0 = vmmov 0   ;;  %v496_v1 = vld [vmem:[#allocation12 + $0xf8] sm:$0xff]  ;;  %v495_v3 = vld [vmem:[#allocation12 + $0xf0] sm:$0xff]  ;;  %v494_v4 = vld [vmem:[#allocation12 + $0xe8] sm:$0xff]  ;;  %v499_v51 = vlaneseq  ;;  %vm460_vm1 = vcmask 7168  }
  0x66   : > { %1278 = vsyncadd (%p1623_p12), [#allocation13], 4294963200  ;;  %956 = vmatprep.subr.mxu0 %v1315_v0  ;;  %988 = vmatprep.mubr.msk.f32.mxu0 %vm1316_vm0, %v1315_v0  ;;  %v380_v2 = vld [vmem:[#allocation11 + $0x78] sm:$0xff]  ;;  %v379_v5 = vld [vmem:[#allocation11 + $0x70] sm:$0xff]  ;;  %462 = vst.msk [vmem:[#allocation4] sm:$0xff] %vm460_vm1, %v1315_v0  ;;  %vm652_vm2 = vcmask 64512  }
  0x67   : > { %573 = vmatprep.mubr.f32.mxu1 %v1315_v0  ;;  %509 = vmatprep.subr.mxu1 %v496_v1  ;;  %v493_v6 = vld [vmem:[#allocation12 + $0xe0] sm:$0xff]  ;;  %v492_v7 = vld [vmem:[#allocation12 + $0xd8] sm:$0xff]  ;;  %v378_v8 = vld [vmem:[#allocation11 + $0x68] sm:$0xff]  ;;  %v500_v52 = vshrl.u32 %v499_v51, 7  ;;  %s932_s2 = sshll.u32 %s1297_s24, 7  ;;  %s359_s14 = scalar_lea.vmem [#allocation14], %s1491_s19 }
  0x68   : > { %957 = vmatpush3.msra.mxu0 %v380_v2  ;;  %510 = vmatpush1.msra.mxu1 %v495_v3  ;;  %v491_v9 = vld [vmem:[#allocation12 + $0xd0] sm:$0xff]  ;;  %v490_v10 = vld [vmem:[#allocation12 + $0xc8] sm:$0xff]  ;;  %v377_v11 = vld [vmem:[#allocation11 + $0x60] sm:$0xff]  ;;  %s787_s15 = sshll.u32 %s359_s14, 4  ;;  %s785_s17 = scalar_lea.hbm %s1603_s6, %s932_s2  ;;  %s788_s15 = int_to_ptr.vmem [resolvable:$true] %s787_s15 }
  0x69   : > { %958 = vmatprep.subr.mxu0 %v1315_v0  ;;  %511 = vmatprep.subr.mxu1 %v494_v4  ;;  %v489_v12 = vld [vmem:[#allocation12 + $0xc0] sm:$0xff]  ;;  %v488_v13 = vld [vmem:[#allocation12 + $0xb8] sm:$0xff]  ;;  %v487_v15 = vld [vmem:[#allocation12 + $0xb0] sm:$0xff]  ;;  %v501_v53 = vsub.s32 0, %v500_v52  ;;  %v505_v55 = vsub.s32 1, %v500_v52  ;;  %v1317_v4 = vmov -inf  }
  0x6a   : > { %959 = vmatpush3.msra.mxu0 %v379_v5  ;;  %512 = vmatpush1.msra.mxu1 %v493_v6  ;;  %v376_v14 = vld [vmem:[#allocation11 + $0x58] sm:$0xff]  ;;  %v486_v16 = vld [vmem:[#allocation12 + $0xa8] sm:$0xff]  ;;  %v375_v17 = vld [vmem:[#allocation11 + $0x50] sm:$0xff]  ;;  %461 = vst.msk [vmem:[#allocation3] sm:$0xff] %vm460_vm1, %v1317_v4  ;;  %s773_s18 = scalar_lea.sflag [#allocation8], %s1488_s12  ;;  %s1213_s1 = scalar_lea.vmem %s788_s15, 128 }
  0x6b   : > { %960 = vmatprep.subr.mxu0 %v1315_v0  ;;  %513 = vmatprep.subr.mxu1 %v492_v7  ;;  %v485_v18 = vld [vmem:[#allocation12 + $0xa0] sm:$0xff]  ;;  %v484_v19 = vld [vmem:[#allocation12 + $0x98] sm:$0xff]  ;;  %v374_v20 = vld [vmem:[#allocation11 + $0x48] sm:$0xff]  ;;  %p1214_p4 = scmp.ne.s32.totalorder %s788_s15, %s1213_s1 }
  0x6c   : > { %961 = vmatpush3.msra.mxu0 %v378_v8  ;;  %514 = vmatpush1.msra.mxu1 %v491_v9  ;;  %v483_v21 = vld [vmem:[#allocation12 + $0x90] sm:$0xff]  ;;  %v482_v22 = vld [vmem:[#allocation12 + $0x88] sm:$0xff]  ;;  %v373_v23 = vld [vmem:[#allocation11 + $0x40] sm:$0xff]  ;;  %v1318_v8 = vmov 0  }
  0x6d   : > { %962 = vmatprep.subr.mxu0 %v1315_v0  ;;  %515 = vmatprep.subr.mxu1 %v490_v10  ;;  %v481_v24 = vld [vmem:[#allocation12 + $0x80] sm:$0xff]  ;;  %v480_v25 = vld [vmem:[#allocation12 + $0x78] sm:$0xff]  ;;  %v479_v27 = vld [vmem:[#allocation12 + $0x70] sm:$0xff]  ;;  %p1215_p3 = pnand %p1214_p4, %p1446_p9 }
  0x6e   : > { %963 = vmatpush3.msra.mxu0 %v377_v11  ;;  %516 = vmatpush1.msra.mxu1 %v489_v12  ;;  %v372_v26 = vld [vmem:[#allocation11 + $0x38] sm:$0xff]  ;;  %v478_v28 = vld [vmem:[#allocation12 + $0x68] sm:$0xff]  ;;  %v371_v29 = vld [vmem:[#allocation11 + $0x30] sm:$0xff] }
  0x6f   : > { %964 = vmatprep.subr.mxu0 %v1315_v0  ;;  %517 = vmatprep.subr.mxu1 %v488_v13  ;;  %v477_v30 = vld [vmem:[#allocation12 + $0x60] sm:$0xff]  ;;  %v476_v31 = vld [vmem:[#allocation12 + $0x58] sm:$0xff]  ;;  %v370_v32 = vld [vmem:[#allocation11 + $0x28] sm:$0xff]  ;;  %p1216_p7 = pneg %p1215_p3 }
  0x70   : > { %965 = vmatpush3.msra.mxu0 %v376_v14  ;;  %518 = vmatpush1.msra.mxu1 %v487_v15  ;;  %v475_v33 = vld [vmem:[#allocation12 + $0x50] sm:$0xff]  ;;  %v474_v34 = vld [vmem:[#allocation12 + $0x48] sm:$0xff]  ;;  %v369_v35 = vld [vmem:[#allocation11 + $0x20] sm:$0xff] }
  0x71   : > { %966 = vmatprep.subr.mxu0 %v1315_v0  ;;  %519 = vmatprep.subr.mxu1 %v486_v16  ;;  %v473_v36 = vld [vmem:[#allocation12 + $0x40] sm:$0xff]  ;;  %v472_v37 = vld [vmem:[#allocation12 + $0x38] sm:$0xff]  ;;  %v471_v39 = vld [vmem:[#allocation12 + $0x30] sm:$0xff] }
  0x72   : > { %967 = vmatpush3.msra.mxu0 %v375_v17  ;;  %520 = vmatpush1.msra.mxu1 %v485_v18  ;;  %v368_v38 = vld [vmem:[#allocation11 + $0x18] sm:$0xff]  ;;  %v470_v40 = vld [vmem:[#allocation12 + $0x28] sm:$0xff]  ;;  %v367_v41 = vld [vmem:[#allocation11 + $0x10] sm:$0xff] }
  0x73   : > { %968 = vmatprep.subr.mxu0 %v1315_v0  ;;  %521 = vmatprep.subr.mxu1 %v484_v19  ;;  %v469_v42 = vld [vmem:[#allocation12 + $0x20] sm:$0xff]  ;;  %v468_v43 = vld [vmem:[#allocation12 + $0x18] sm:$0xff]  ;;  %v366_v44 = vld [vmem:[#allocation11 + $0x8] sm:$0xff] }
  0x74   : > { %969 = vmatpush3.msra.mxu0 %v374_v20  ;;  %522 = vmatpush1.msra.mxu1 %v483_v21  ;;  %v467_v45 = vld [vmem:[#allocation12 + $0x10] sm:$0xff]  ;;  %v466_v46 = vld [vmem:[#allocation12 + $0x8] sm:$0xff]  ;;  %v365_v47 = vld [vmem:[#allocation11] sm:$0xff] }
  0x75   : > { %970 = vmatprep.subr.mxu0 %v1315_v0  ;;  %523 = vmatprep.subr.mxu1 %v482_v22  ;;  %v465_v48 = vld [vmem:[#allocation12] sm:$0xff]  ;;  %v464_v50 = vld [vmem:[%s318_s8] sm:$0xff] }
  0x76   : > { %971 = vmatpush3.msra.mxu0 %v373_v23  ;;  %524 = vmatpush1.msra.mxu1 %v481_v24  ;;  %v364_v49 = vld [vmem:[%s309_s28] sm:$0xff]  ;;  %v497_v54 = vld [vmem:[%s1602_s5] sm:$0x3]  ;;  %v668_v19 = vld [vmem:[#allocation4] sm:$0xff]  ;;  %s1319_s28 = smov [#allocation14]  }
  0x77   : > { %972 = vmatprep.subr.mxu0 %v1315_v0  ;;  %525 = vmatprep.subr.mxu1 %v480_v25  ;;  %v929_v56 = vld [vmem:[%s1600_s3] ss:$0 sm:$0xff]  ;;  %v502_v57 = vrot.slane %v497_v54, %v501_v53  ;;  %v506_v59 = vrot.slane %v497_v54, %v505_v55  ;;  %s1217_s4 = sshll.u32 %s1319_s28, 4  ;;  %s1218_s4 = int_to_ptr.vmem [resolvable:$false] %s1217_s4 }
  0x78   : > { %973 = vmatpush3.msra.mxu0 %v372_v26  ;;  %526 = vmatpush1.msra.mxu1 %v479_v27  ;;  %v651_v9 = vld [vmem:[#allocation3] sm:$0xff]  ;;  %s1219_s24 = scalar_lea.vmem %s1218_s4, 256  ;;  %p1220_p13 = scmp.lt.s32.totalorder %s788_s15, %s1218_s4 }
  0x79   : > { %974 = vmatprep.subr.mxu0 %v1315_v0  ;;  %527 = vmatprep.subr.mxu1 %v478_v28  ;;  %p1221_p5 = scmp.lt.s32.totalorder %s1219_s24, %s1213_s1 }
  0x7a   : > { %975 = vmatpush3.msra.mxu0 %v371_v29  ;;  %528 = vmatpush1.msra.mxu1 %v477_v30 }
  0x7b   : > { %976 = vmatprep.subr.mxu0 %v1315_v0  ;;  %529 = vmatprep.subr.mxu1 %v476_v31  ;;  %p1222_p10 = por %p1221_p5, %p1220_p13 }
  0x7c   : > { %977 = vmatpush3.msra.mxu0 %v370_v32  ;;  %530 = vmatpush1.msra.mxu1 %v475_v33 }
  0x7d   : > { %978 = vmatprep.subr.mxu0 %v1315_v0  ;;  %531 = vmatprep.subr.mxu1 %v474_v34  ;;  %p1223_p1 = pnand %p1222_p10, %p1216_p7 }
  0x7e   : > { %979 = vmatpush3.msra.mxu0 %v369_v35  ;;  %532 = vmatpush1.msra.mxu1 %v473_v36 }
  0x7f   : > { %980 = vmatprep.subr.mxu0 %v1315_v0  ;;  %533 = vmatprep.subr.mxu1 %v472_v37 }
  0x80   : > { %981 = vmatpush3.msra.mxu0 %v368_v38  ;;  %534 = vmatpush1.msra.mxu1 %v471_v39 }
  0x81   : > { %982 = vmatprep.subr.mxu0 %v1315_v0  ;;  %535 = vmatprep.subr.mxu1 %v470_v40 }
  0x82   : > { %983 = vmatpush3.msra.mxu0 %v367_v41  ;;  %536 = vmatpush1.msra.mxu1 %v469_v42 }
  0x83   : > { %984 = vmatprep.subr.mxu0 %v1315_v0  ;;  %537 = vmatprep.subr.mxu1 %v468_v43 }
  0x84   : > { %985 = vmatpush3.msra.mxu0 %v366_v44  ;;  %538 = vmatpush1.msra.mxu1 %v467_v45 }
  0x85   : > { %986 = vmatprep.subr.mxu0 %v1315_v0  ;;  %539 = vmatprep.subr.mxu1 %v466_v46 }
  0x86   : > { %987 = vmatpush3.msra.mxu0 %v365_v47  ;;  %540 = vmatpush1.msra.mxu1 %v465_v48 }
  0x87   : > { %989 = vmatmul.mubr.f32.vlgmr.msra.gmra.mxu0 %v364_v49  ;;  %574 = vmatmul.mubr.f32.vlgmr.msra.gmra.mxu1 %v464_v50 }
  0x88   : > { %991 = vmatprep.subr.mxu0 %v1315_v0  ;;  %996 = vmatprep.subr.mxu1 %v1315_v0 }
  0x89   : > { %993 = vmatprep.mubr.msk.f32.mxu0 %vm1316_vm0, %v1315_v0  ;;  %998 = vmatprep.mubr.msk.f32.mxu1 %vm1316_vm0, %v1315_v0 }
  0x8a   : > { %1097 = vset.pattern.permute.xlu0 %v1318_v8  ;;  %1098 = vset.pattern.permute.xlu1 %v1318_v8 }
 0x147   : > { %v454_v58 = vpop.f32.mrf.mxu0  ;;  %v575_v61 = vpop.f32.mrf.mxu1 }
 0x148   : > { %v455_v60 = vadd.f32 %v929_v56, %v454_v58  ;;  %v576_v62 = vadd.f32 %v575_v61, %v502_v57 }
 0x149   : > { %v990_v63 = vpop.f32.mrf.mxu0  ;;  %v577_v2 = vpop.f32.mrf.mxu1 }
 0x14a   : > { %v458_v1 = vmul.f32 0.17677669, %v455_v60  ;;  %v578_v3 = vadd.f32 %v577_v2, %v506_v59  ;;  %992 = vmatpush3.xpose.msra.mxu0 %v576_v62 }
 0x14c   : > { %997 = vmatpush3.msra.mxu1 %v578_v3 }
 0x14d   : > { %994 = vmatmul.mubr.f32.vlgmr.msra.gmra.mxu0 %v458_v1 }
 0x20d   : > { %v647_v5 = vpop.f32.mrf.mxu0 }
 0x20e   : > { %v653_v6 = vsel %vm652_vm2, %v647_v5, -inf }
 0x20f   : > { %654 = vmax.xlane.f32.xlu0 %v653_v6  ;;  %v995_v7 = vpop.f32.mrf.mxu0 }
 0x298   : > { %v655_v10 = vpop.xlane.xlu0 %654 }
 0x299   : > { %v656_v11 = vmax.f32 %v651_v9, %v655_v10 }
 0x29b   : > { %v657_v12 = vsub.f32 %v651_v9, %v656_v11  ;;  %758 = vst.msk [vmem:[#allocation3] sm:$0xff] %vm460_vm1, %v656_v11  ;;  %662 = vperm.xlu0 %1097, %v656_v11  }
 0x29d   : > { %v658_v16 = vmul.f32 1.442695, %v657_v12 }
 0x316   : > { %v663_v13 = vpop.permute.xlu0 %662 }
 0x317   : > { %v665_v14 = vsub.f32 %v647_v5, %v663_v13 }
 0x319   : > { %v666_v15 = vmul.f32 1.442695, %v665_v14 }
 0x31b   : > { %1099 = vpow2.f32 %v666_v15 }
 0x31c   : > { %1101 = vpow2.f32 %v658_v16 }
 0x328   : > { %v1100_v0 = vpop.eup %1099 }
 0x329   : > { %999 = vmatmul.mubr.msk.f32.vlgmr.msra.gmra.mxu1 %vm652_vm2, %v1100_v0  ;;  %v670_v17 = vsel %vm652_vm2, %v1100_v0, 0.0  ;;  %v1102_v18 = vpop.eup %1101 }
 0x32a   : > { %671 = vadd.xlane.f32.xlu1 %v670_v17  ;;  %v669_v20 = vmul.f32 %v1102_v18, %v668_v19 }
 0x33b   : > { %679 = vperm.xlu1 %1098, %v1102_v18  }
 0x3b3   : > { %v672_v21 = vpop.xlane.xlu1 %671 }
 0x3b4   : > { %v673_v22 = vadd.f32 %v672_v21, %v669_v20 }
 0x3b6   : > { %675 = vst.msk [vmem:[#allocation4] sm:$0xff] %vm460_vm1, %v673_v22 }
 0x3b7   : > { %v680_v27 = vpop.permute.xlu1 %679 }
 0x3b8   : > { %v682_v28 = vmul.f32 0.0, %v680_v27 }
 0x3bd   : > { %v762_v23 = vld [vmem:[#allocation4] sm:$0xff] }
 0x3be   : > { %1103 = vrcp.f32 %v762_v23 }
 0x3cb   : > { %v1104_v24 = vpop.eup %1103 }
 0x3cc   : > { %767 = vperm.xlu1 %1098, %v1104_v24  }
 0x3e9   : > { %v752_v25 = vpop.f32.mrf.mxu1 }
 0x3ea   : > { %v756_v29 = vadd.f32 %v752_v25, %v682_v28 }
 0x3eb   : > { %v1000_v26 = vpop.f32.mrf.mxu1 }
 0x447   : > { %v768_v30 = vpop.permute.xlu1 %767 }
 0x448   : > { %v770_v31 = vmul.f32 %v768_v30, %v756_v29 }
 0x44a   : > { %771 = vst [vmem:[%s359_s14] sm:$0xff] %v770_v31 }
 0x44b   : > { %1226 = shalt.err (!%p1223_p1)
}
 0x44c   : > { %s1227_s19 = scalar_lea.hbm %s785_s17, 128  ;;  %s1231_s8 = scalar_lea.hbm %s1603_s6, 256 }
 0x44d   : > { %p1228_p2 = scmp.ne.s32.totalorder %s785_s17, %s1227_s19  ;;  %p1232_p11 = scmp.lt.s32.totalorder %s785_s17, %s1603_s6 }
 0x44e   : > { %p1233_p0 = scmp.lt.s32.totalorder %s1231_s8, %s1227_s19 }
 0x44f   : > { %p1229_p6 = pnand %p1228_p2, %p1446_p9 }
 0x450   : > { %p1234_p12 = por %p1233_p0, %p1232_p11 }
 0x451   : > { %p1230_p8 = pneg %p1229_p6 }
 0x453   : > { %p1235_p4 = pnand %p1234_p12, %p1230_p8 }
 0x455   : > { %1238 = shalt.err (!%p1235_p4)
}
 0x456   : > { %1013 = dma.vmem_to_hbm [thread:$0]  (%p1446_p9), %s788_s15, 128, %s785_s17, %s773_s18  }
 0x457 PF: > { %s799_s11 = sand.u32 1, %s1285_s21   ;;  %p1624_p3 = scmp.ne.s32.totalorder %s1610_s30, 0 }
 0x458   : > { %p1625_p7 = scmp.ge.s32.totalorder %s1305_s26, 2  ;;  %s800_s20 = scalar_lea.sflag [#allocation8], %s799_s11 }
 0x45a   : > { %p1030_p13 = pnand %p1625_p7, %p1624_p3 }
 0x45c   : > { %p1031_p5 = pneg %p1030_p13 }
 0x45e   : > { %1280 = dma.done.wait (%p1031_p5), %s800_s20, 128  }
 0x45f   : > { %1282 = vsyncadd (%p1031_p5), %s800_s20, 4294967168  ;;  %s26_s26 = sadd.s32 1, %s1305_s26   ;;  %s1626_s21 = smov %s1289_s22 }
 0x460   : > { %p23_p10 = scmp.ge.s32.totalorder %s26_s26, 4   ;;  %s1627_s22 = smov %s1293_s23 }
 0x461   : > { %s1628_s23 = smov %s1455_s16  ;;  %s1629_s24 = smov %s1301_s25 }
 0x462   : > { %s1630_s25 = smov %s1632_s9  ;;  %25 = sbr.rel (!%p23_p10) target bundleno = 14 (0xe), region = 118 }
 0x467   :  { %805 = vsyncpa [#allocation7], 1 }
 0x468   :  { %807 = vsyncpa [#allocation7 + $0x1], 1 }
 0x469   :  { %808 = vsyncpa [#allocation10], 1 }
 0x46a   :  { %810 = vsyncpa [#allocation10 + $0x1], 1 }
 0x46b   :  { %811 = vsyncpa [#allocation13], 1 }
 0x46c   :  { %812 = vsyncpa [#allocation8], 1 }
 0x46d   :  { %814 = vsyncpa [#allocation8 + $0x1], 1 }

</bundles_post_ra>
